<compile_context>
chip_gen: v6e
topology: v6e:2x2x1
jax: 0.10.0
libtpu: 0.0.40
codegen_flags: <defaults>
</compile_context>

<pallas_src>
import jax
import jax.numpy as jnp
from jax import lax
from jax.experimental import pallas as pl
from jax.experimental.pallas import tpu as pltpu

BN_EPS = 1e-5
_LANES = 128          # lane width of the packed weight slab
_BF16_SUBLANE = 16    # bf16 sublane tile -> keep slab row offsets 16-aligned


def _round_up(n, m):
    return (n + m - 1) // m * m


def _bn_relu(h, gamma, beta):
    """Training-mode BatchNorm1d (+affine) folded to scale/shift, then ReLU. f32 math."""
    mean = jnp.mean(h, axis=0, keepdims=True)
    var = jnp.mean(h * h, axis=0, keepdims=True) - mean * mean   # one-pass biased var
    var = jnp.maximum(var, 0.0)                                   # cancellation insurance
    scale = gamma * lax.rsqrt(var + BN_EPS)                       # rsqrt -> EUP slot
    shift = beta - mean * scale
    return jnp.maximum(h * scale + shift, 0.0)


def _make_kernel(in_dim, hidden, out_dim, r1, r2):
    """Build the fused kernel; slab geometry is baked in as static Python ints."""

    def kernel(x_ref, w_ref, p_ref, o_ref):
        # Single full loads; everything below is static slicing of in-register values.
        w = w_ref[...].astype(jnp.float32)     # bf16 slab -> f32 once (trivial VPU pass)
        p = p_ref[...]                         # f32 param slab

        w1 = w[0:in_dim, 0:hidden]
        w2 = w[r1:r1 + hidden, 0:hidden]
        w3 = w[r1 + r2:r1 + r2 + hidden, 0:out_dim]
        g1, be1 = p[0:1, 0:hidden], p[1:2, 0:hidden]
        g2, be2 = p[2:3, 0:hidden], p[3:4, 0:hidden]
        b3 = p[4:5, 0:out_dim]

        # fc1 (bias dropped: cancelled by BN mean subtraction) -> bn1 -> relu
        h = jnp.dot(x_ref[...], w1, preferred_element_type=jnp.float32)
        h = _bn_relu(h, g1, be1)
        # fc2 (bias dropped) -> bn2 -> relu
        h = jnp.dot(h, w2, preferred_element_type=jnp.float32)
        h = _bn_relu(h, g2, be2)
        # fc3 (+ bias); true-shape output — single-vreg masked store is essentially free
        out = jnp.dot(h, w3, preferred_element_type=jnp.float32) + b3
        o_ref[...] = out.astype(o_ref.dtype)

    return kernel


def prepare_params(params):
    """One-time host-side prep (hoisted out of the per-call path).

    Packs w1/w2/w3 into a single bf16 slab (lane-padded to 128, 16-row-aligned sublane
    offsets) and gamma/beta/b3 into a single f32 slab. Reuse the result for every call.
    """
    in_dim, hidden = params["w1"].shape
    out_dim = params["w3"].shape[1]

    r1 = _round_up(in_dim, _BF16_SUBLANE)
    r2 = _round_up(hidden, _BF16_SUBLANE)
    r3 = _round_up(hidden, _BF16_SUBLANE)

    w_slab = jnp.zeros((r1 + r2 + r3, _LANES), jnp.float32)
    w_slab = w_slab.at[0:in_dim, 0:hidden].set(params["w1"])
    w_slab = w_slab.at[r1:r1 + hidden, 0:hidden].set(params["w2"])
    w_slab = w_slab.at[r1 + r2:r1 + r2 + hidden, 0:out_dim].set(params["w3"])
    w_slab = w_slab.astype(jnp.bfloat16)

    pw = max(hidden, out_dim)
    p_slab = jnp.zeros((8, pw), jnp.float32)   # 8 rows: one clean f32 sublane tile
    p_slab = p_slab.at[0, 0:hidden].set(params["g1"][0])
    p_slab = p_slab.at[1, 0:hidden].set(params["be1"][0])
    p_slab = p_slab.at[2, 0:hidden].set(params["g2"][0])
    p_slab = p_slab.at[3, 0:hidden].set(params["be2"][0])
    p_slab = p_slab.at[4, 0:out_dim].set(params["b3"][0])

    return {
        "w_slab": jax.device_put(w_slab),
        "p_slab": jax.device_put(p_slab),
        "dims": (in_dim, hidden, out_dim, r1, r2),
    }


def mlp_forward(x, prep):
    """x: [B, input_dim] float32. prep: output of prepare_params (prepared once)."""
    in_dim, hidden, out_dim, r1, r2 = prep["dims"]
    B = x.shape[0]
    w_slab, p_slab = prep["w_slab"], prep["p_slab"]

    kernel = _make_kernel(in_dim, hidden, out_dim, r1, r2)

    # Single grid point: at B=16 / H=32 everything fits in one VMEM block, any tiling
    # is pure per-step overhead. Blocks equal full array dims (allowed by the (8,128)
    # rule). index_maps are capture-free zero-arg lambdas since grid=().
    return pl.pallas_call(
        kernel,
        grid=(),
        in_specs=[
            pl.BlockSpec(x.shape, lambda: (0, 0)),
            pl.BlockSpec(w_slab.shape, lambda: (0, 0)),
            pl.BlockSpec(p_slab.shape, lambda: (0, 0)),
        ],
        out_specs=pl.BlockSpec((B, out_dim), lambda: (0, 0)),
        out_shape=jax.ShapeDtypeStruct((B, out_dim), jnp.float32),
        compiler_params=pltpu.CompilerParams(
            vmem_limit_bytes=2 * 1024 * 1024,   # footprint < 0.5 MiB; keep v7x headroom
        ),
    )(x, w_slab, p_slab)


def init_params(key, input_dim, hidden_dim, output_dim):
    """Deterministic synthetic parameters matching MLPModel's shapes (PyTorch init)."""
    ks = jax.random.split(key, 6)

    def linear(kw, kb, fan_in, fan_out):
        bound = 1.0 / jnp.sqrt(jnp.float32(fan_in))
        w = jax.random.uniform(kw, (fan_in, fan_out), jnp.float32, -bound, bound)
        b = jax.random.uniform(kb, (1, fan_out), jnp.float32, -bound, bound)
        return w, b

    w1, b1 = linear(ks[0], ks[1], input_dim, hidden_dim)
    w2, b2 = linear(ks[2], ks[3], hidden_dim, hidden_dim)
    w3, b3 = linear(ks[4], ks[5], hidden_dim, output_dim)

    return {
        "w1": w1, "b1": b1,
        "g1": jnp.ones((1, hidden_dim), jnp.float32),
        "be1": jnp.zeros((1, hidden_dim), jnp.float32),
        "w2": w2, "b2": b2,
        "g2": jnp.ones((1, hidden_dim), jnp.float32),
        "be2": jnp.zeros((1, hidden_dim), jnp.float32),
        "w3": w3, "b3": b3,
    }


def mlp_reference_f32(x, p):
    """Exact PyTorch-module semantics: f32 matmuls + biases, two-pass BN stats."""
    def bn_relu(h, g, b):
        m = jnp.mean(h, axis=0, keepdims=True)
        v = jnp.mean((h - m) ** 2, axis=0, keepdims=True)
        return jnp.maximum((h - m) / jnp.sqrt(v + BN_EPS) * g + b, 0.0)

    h = bn_relu(x @ p["w1"] + p["b1"], p["g1"], p["be1"])
    h = bn_relu(h @ p["w2"] + p["b2"], p["g2"], p["be2"])
    return h @ p["w3"] + p["b3"]


def mlp_reference_kernel_math(x, p):
    """Mirrors the kernel's arithmetic: bf16-rounded weights upcast to f32, f32 matmuls
    and BN math, dropped pre-BN biases, folded scale/shift, clamped one-pass variance."""
    def w_bf(w):
        return w.astype(jnp.bfloat16).astype(jnp.float32)

    def bn_relu(h, g, b):
        m = jnp.mean(h, axis=0, keepdims=True)
        v = jnp.maximum(jnp.mean(h * h, axis=0, keepdims=True) - m * m, 0.0)
        s = g * lax.rsqrt(v + BN_EPS)
        return jnp.maximum(h * s + (b - m * s), 0.0)

    h = bn_relu(jnp.dot(x, w_bf(p["w1"])), p["g1"], p["be1"])
    h = bn_relu(jnp.dot(h, w_bf(p["w2"])), p["g2"], p["be2"])
    return jnp.dot(h, w_bf(p["w3"])) + p["b3"]


if __name__ == "__main__":
    key = jax.random.PRNGKey(0)
    k_x, k_p = jax.random.split(key)

    batch, input_dim, hidden_dim, output_dim = 16, 16, 32, 8
    x = jax.random.normal(k_x, (batch, input_dim), jnp.float32)
    params = init_params(k_p, input_dim, hidden_dim, output_dim)

    # One-time prep (hoisted out of the per-call path), then the fused forward.
    prep = prepare_params(params)
    out = mlp_forward(x, prep)
    jax.block_until_ready(out)
    assert out.shape == (batch, output_dim)

    # 1) Check against a mirror of the kernel's own arithmetic.
    mirror = mlp_reference_kernel_math(x, params)
    assert jnp.allclose(out, mirror, atol=2e-2, rtol=2e-2)

    # 2) Semantic check against the full-f32 PyTorch-equivalent forward
    #    (bf16 weight storage is the only deliberate deviation).
    ref = mlp_reference_f32(x, params)
    assert jnp.allclose(out, ref, atol=5e-2, rtol=5e-2)

    print("KERNEL_OK")
</pallas_src>

<mosaic_0001>
module attributes {stable_mosaic.version = 11 : i64} {
  func.func @kernel(%arg0: memref<16x16xf32, #tpu.memory_space<vmem>>, %arg1: memref<80x128xbf16, #tpu.memory_space<vmem>>, %arg2: memref<8x32xf32, #tpu.memory_space<vmem>>, %arg3: memref<16x8xf32, #tpu.memory_space<vmem>>) attributes {dimension_semantics = [], scalar_prefetch = 0 : i64, scratch_operands = 0 : i64, tpu.core_type = #tpu.core_type<tc>} {
    %c0 = arith.constant 0 : index
    %c0_0 = arith.constant 0 : index
    %0 = vector.load %arg1[%c0, %c0_0] : memref<80x128xbf16, #tpu.memory_space<vmem>>, vector<80x128xbf16>
    %1 = arith.extf %0 : vector<80x128xbf16> to vector<80x128xf32>
    %c0_1 = arith.constant 0 : index
    %c0_2 = arith.constant 0 : index
    %2 = vector.load %arg2[%c0_1, %c0_2] : memref<8x32xf32, #tpu.memory_space<vmem>>, vector<8x32xf32>
    %3 = vector.extract_strided_slice %1 {offsets = [0, 0], sizes = [16, 32], strides = [1, 1]} : vector<80x128xf32> to vector<16x32xf32>
    %4 = vector.extract_strided_slice %1 {offsets = [16, 0], sizes = [32, 32], strides = [1, 1]} : vector<80x128xf32> to vector<32x32xf32>
    %5 = vector.extract_strided_slice %1 {offsets = [48, 0], sizes = [32, 8], strides = [1, 1]} : vector<80x128xf32> to vector<32x8xf32>
    %6 = vector.extract_strided_slice %2 {offsets = [0, 0], sizes = [1, 32], strides = [1, 1]} : vector<8x32xf32> to vector<1x32xf32>
    %7 = vector.extract_strided_slice %2 {offsets = [1, 0], sizes = [1, 32], strides = [1, 1]} : vector<8x32xf32> to vector<1x32xf32>
    %8 = vector.extract_strided_slice %2 {offsets = [2, 0], sizes = [1, 32], strides = [1, 1]} : vector<8x32xf32> to vector<1x32xf32>
    %9 = vector.extract_strided_slice %2 {offsets = [3, 0], sizes = [1, 32], strides = [1, 1]} : vector<8x32xf32> to vector<1x32xf32>
    %10 = vector.extract_strided_slice %2 {offsets = [4, 0], sizes = [1, 8], strides = [1, 1]} : vector<8x32xf32> to vector<1x8xf32>
    %c0_3 = arith.constant 0 : index
    %c0_4 = arith.constant 0 : index
    %11 = vector.load %arg0[%c0_3, %c0_4] : memref<16x16xf32, #tpu.memory_space<vmem>>, vector<16x16xf32>
    %cst = arith.constant dense<0.000000e+00> : vector<16x32xf32>
    %12 = tpu.matmul %11, %3, %cst {dimension_numbers = #tpu.dot_dimension_numbers<[1], [0], [0], [1], [0, 0, 1, 1], [], []>} : vector<16x16xf32>, vector<16x32xf32>, vector<16x32xf32> -> vector<16x32xf32>
    %cst_5 = arith.constant dense<0.000000e+00> : vector<32xf32>
    %13 = vector.multi_reduction <add>, %12, %cst_5 [0] : vector<16x32xf32> to vector<32xf32>
    %14 = vector.shape_cast %13 : vector<32xf32> to vector<1x32xf32>
    %cst_6 = arith.constant 1.600000e+01 : f32
    %15 = vector.broadcast %cst_6 : f32 to vector<1x32xf32>
    %16 = arith.divf %14, %15 : vector<1x32xf32>
    %17 = arith.mulf %12, %12 : vector<16x32xf32>
    %cst_7 = arith.constant dense<0.000000e+00> : vector<32xf32>
    %18 = vector.multi_reduction <add>, %17, %cst_7 [0] : vector<16x32xf32> to vector<32xf32>
    %19 = vector.shape_cast %18 : vector<32xf32> to vector<1x32xf32>
    %cst_8 = arith.constant 1.600000e+01 : f32
    %20 = vector.broadcast %cst_8 : f32 to vector<1x32xf32>
    %21 = arith.divf %19, %20 : vector<1x32xf32>
    %22 = arith.mulf %16, %16 : vector<1x32xf32>
    %23 = arith.subf %21, %22 : vector<1x32xf32>
    %cst_9 = arith.constant 0.000000e+00 : f32
    %24 = vector.broadcast %cst_9 : f32 to vector<1x32xf32>
    %25 = arith.maximumf %23, %24 : vector<1x32xf32>
    %cst_10 = arith.constant 9.99999974E-6 : f32
    %26 = vector.broadcast %cst_10 : f32 to vector<1x32xf32>
    %27 = arith.addf %25, %26 : vector<1x32xf32>
    %28 = math.rsqrt %27 : vector<1x32xf32>
    %29 = arith.mulf %6, %28 : vector<1x32xf32>
    %30 = arith.mulf %16, %29 : vector<1x32xf32>
    %31 = arith.subf %7, %30 : vector<1x32xf32>
    %32 = vector.broadcast %29 : vector<1x32xf32> to vector<16x32xf32>
    %33 = arith.mulf %12, %32 : vector<16x32xf32>
    %34 = vector.broadcast %31 : vector<1x32xf32> to vector<16x32xf32>
    %35 = arith.addf %33, %34 : vector<16x32xf32>
    %cst_11 = arith.constant 0.000000e+00 : f32
    %36 = vector.broadcast %cst_11 : f32 to vector<16x32xf32>
    %37 = arith.maximumf %35, %36 : vector<16x32xf32>
    %cst_12 = arith.constant dense<0.000000e+00> : vector<16x32xf32>
    %38 = tpu.matmul %37, %4, %cst_12 {dimension_numbers = #tpu.dot_dimension_numbers<[1], [0], [0], [1], [0, 0, 1, 1], [], []>} : vector<16x32xf32>, vector<32x32xf32>, vector<16x32xf32> -> vector<16x32xf32>
    %cst_13 = arith.constant dense<0.000000e+00> : vector<32xf32>
    %39 = vector.multi_reduction <add>, %38, %cst_13 [0] : vector<16x32xf32> to vector<32xf32>
    %40 = vector.shape_cast %39 : vector<32xf32> to vector<1x32xf32>
    %cst_14 = arith.constant 1.600000e+01 : f32
    %41 = vector.broadcast %cst_14 : f32 to vector<1x32xf32>
    %42 = arith.divf %40, %41 : vector<1x32xf32>
    %43 = arith.mulf %38, %38 : vector<16x32xf32>
    %cst_15 = arith.constant dense<0.000000e+00> : vector<32xf32>
    %44 = vector.multi_reduction <add>, %43, %cst_15 [0] : vector<16x32xf32> to vector<32xf32>
    %45 = vector.shape_cast %44 : vector<32xf32> to vector<1x32xf32>
    %cst_16 = arith.constant 1.600000e+01 : f32
    %46 = vector.broadcast %cst_16 : f32 to vector<1x32xf32>
    %47 = arith.divf %45, %46 : vector<1x32xf32>
    %48 = arith.mulf %42, %42 : vector<1x32xf32>
    %49 = arith.subf %47, %48 : vector<1x32xf32>
    %cst_17 = arith.constant 0.000000e+00 : f32
    %50 = vector.broadcast %cst_17 : f32 to vector<1x32xf32>
    %51 = arith.maximumf %49, %50 : vector<1x32xf32>
    %cst_18 = arith.constant 9.99999974E-6 : f32
    %52 = vector.broadcast %cst_18 : f32 to vector<1x32xf32>
    %53 = arith.addf %51, %52 : vector<1x32xf32>
    %54 = math.rsqrt %53 : vector<1x32xf32>
    %55 = arith.mulf %8, %54 : vector<1x32xf32>
    %56 = arith.mulf %42, %55 : vector<1x32xf32>
    %57 = arith.subf %9, %56 : vector<1x32xf32>
    %58 = vector.broadcast %55 : vector<1x32xf32> to vector<16x32xf32>
    %59 = arith.mulf %38, %58 : vector<16x32xf32>
    %60 = vector.broadcast %57 : vector<1x32xf32> to vector<16x32xf32>
    %61 = arith.addf %59, %60 : vector<16x32xf32>
    %cst_19 = arith.constant 0.000000e+00 : f32
    %62 = vector.broadcast %cst_19 : f32 to vector<16x32xf32>
    %63 = arith.maximumf %61, %62 : vector<16x32xf32>
    %cst_20 = arith.constant dense<0.000000e+00> : vector<16x8xf32>
    %64 = tpu.matmul %63, %5, %cst_20 {dimension_numbers = #tpu.dot_dimension_numbers<[1], [0], [0], [1], [0, 0, 1, 1], [], []>} : vector<16x32xf32>, vector<32x8xf32>, vector<16x8xf32> -> vector<16x8xf32>
    %65 = vector.broadcast %10 : vector<1x8xf32> to vector<16x8xf32>
    %66 = arith.addf %64, %65 : vector<16x8xf32>
    %c0_21 = arith.constant 0 : index
    %c0_22 = arith.constant 0 : index
    %67 = vector.load %arg3[%c0_21, %c0_22] : memref<16x8xf32, #tpu.memory_space<vmem>>, vector<16x8xf32>
    tpu.vector_store %arg3[%c0_21, %c0_22], %66 {strides = array<i32>} : memref<16x8xf32, #tpu.memory_space<vmem>>, vector<16x8xf32>,
    return
  }
}

</mosaic_0001>

<bundles_post_ra>
// kernel: tpu_custom_call.1
= control target key start
LH: loop header
LB: loop body
LE: loop exit
PB: predicated region body
PF: predicated region fallthrough
CT: control target
= control target key end

     0   :  { %8 = vsyncpa [#allocation3], 0  ;;  %s647_s0 = inlined_call_operand.hbm [shape: f32[16,16], index: 0, kind: input, shape index: {}]   ;;  %s648_s1 = inlined_call_operand.hbm [shape: bf16[80,128], index: 1, kind: input, shape index: {}]   ;;  %s649_s2 = inlined_call_operand.hbm [shape: f32[8,32], index: 2, kind: input, shape index: {}]   ;;  %s650_s3 = inlined_call_operand.vmem [shape: f32[16,8], index: 3, kind: output, shape index: {}]  }
   0x1   :  { %9 = vsyncpa [#allocation5], 0  ;;  %s579_s12 = smov [#allocation4]  }
   0x2   :  { %s27_s13 = sshll.u32 %s579_s12, 4  ;;  %s28_s13 = int_to_ptr.vmem [resolvable:$true] %s27_s13 }
   0x3   :  { %s523_s14 = scalar_lea.vmem %s28_s13, 640  ;;  %p528_p1 = scmp.lt.s32.totalorder %s28_s13, %s28_s13 }
   0x4   :  { %p524_p0 = scmp.ne.s32.totalorder %s28_s13, %s523_s14  ;;  %p529_p2 = scmp.lt.s32.totalorder %s523_s14, %s523_s14 }
   0x6   :  { %p530_p3 = por %p529_p2, %p528_p1 }
   0x8   :  { %p531_p4 = pnand %p530_p3, %p524_p0 }
   0xa   :  { %534 = shalt.err (!%p531_p4)
}
   0xb   :  { %s580_s15 = smov 64   ;;  %s581_s16 = smov 4  }
   0xc   :  { %33 = dma.hbm_to_vmem [thread:$0]  %s648_s1, 640, %s28_s13, [#allocation5], %s580_s15, %s580_s15, %s581_s16  }
   0xd   :  { %s582_s19 = smov [#allocation2]  }
   0xe   :  { %s15_s20 = sshll.u32 %s582_s19, 4  ;;  %s16_s20 = int_to_ptr.vmem [resolvable:$true] %s15_s20 }
   0xf   :  { %s543_s21 = scalar_lea.vmem %s16_s20, 256  ;;  %p548_p6 = scmp.lt.s32.totalorder %s16_s20, %s16_s20 }
  0x10   :  { %p544_p5 = scmp.ne.s32.totalorder %s16_s20, %s543_s21  ;;  %p549_p7 = scmp.lt.s32.totalorder %s543_s21, %s543_s21 }
  0x12   :  { %p550_p8 = por %p549_p7, %p548_p6 }
  0x14   :  { %p551_p9 = pnand %p550_p8, %p544_p5 }
  0x16   :  { %554 = shalt.err (!%p551_p9)
}
  0x17   :  { %s583_s22 = smov 128   ;;  %s584_s23 = smov 8  }
  0x18   :  { %21 = dma.hbm_to_vmem [thread:$0]  %s647_s0, 256, %s16_s20, [#allocation3], %s583_s22, %s583_s22, %s584_s23  }
  0x19   :  { %s585_s26 = smov [#allocation6]  }
  0x1a   :  { %s40_s27 = sshll.u32 %s585_s26, 4  ;;  %s41_s27 = int_to_ptr.vmem [resolvable:$true] %s40_s27 }
  0x1b   :  { %s563_s1 = scalar_lea.vmem %s41_s27, 128  ;;  %p568_p11 = scmp.lt.s32.totalorder %s41_s27, %s41_s27 }
  0x1c   :  { %p564_p10 = scmp.ne.s32.totalorder %s41_s27, %s563_s1  ;;  %p569_p12 = scmp.lt.s32.totalorder %s563_s1, %s563_s1 }
  0x1e   :  { %p570_p13 = por %p569_p12, %p568_p11 }
  0x20   :  { %p571_p0 = pnand %p570_p13, %p564_p10 }
  0x22   :  { %574 = shalt.err (!%p571_p0)
}
  0x23   :  { %43 = dma.hbm_to_vmem [thread:$0]  %s649_s2, 128, %s41_s27, [#allocation5]  }
  0x24   :  { %575 = dma.done.wait [#allocation3], 256  }
  0x25   :  { %576 = vsyncadd [#allocation3], 4294967040 }
  0x26   :  { %577 = dma.done.wait [#allocation5], 768  }
  0x27   :  { %578 = vsyncadd [#allocation5], 4294966528  ;;  %vm76_vm0 = vcmask 130048   ;;  %v436_v0 = vld [vmem:[#allocation4] sm:$0xff]   ;;  %v74_v1 = vld [vmem:[#allocation2] sm:$0xff]  ;;  %vm158_vm1 = vcmask 261120   ;;  %v193_v39 = vlaneseq }
  0x28   :  { %v437_v2 = vunpack.c.l.bf16 %v436_v0  ;;  %v438_v3 = vunpack.c.h.bf16 %v436_v0  ;;  %479 = vmatprep.mubr.msk.f32.mxu0 %vm76_vm0, %v74_v1  ;;  %v75_v4 = vld [vmem:[#allocation2 + $0x8] sm:$0xff]  ;;  %v456_v5 = vld [vmem:[#allocation4 + $0x10] sm:$0xff]   ;;  %v455_v6 = vld [vmem:[#allocation4 + $0x8] sm:$0xff]   ;;  %vm420_vm2 = vcmask 64512  }
  0x29   :  { %v445_v7 = vunpack.c.l.bf16 %v456_v5  ;;  %v446_v8 = vunpack.c.h.bf16 %v456_v5  ;;  %v442_v9 = vunpack.c.h.bf16 %v455_v6  ;;  %v441_v10 = vunpack.c.l.bf16 %v455_v6  ;;  %v621_v41 = vld [vmem:[#allocation6] sm:$0xff]  ;;  %v458_v57 = vld [vmem:[#allocation4 + $0x20] sm:$0xff]   ;;  %v457_v60 = vld [vmem:[#allocation4 + $0x18] sm:$0xff]  }
  0x2a   :  { %475 = vmatprep.subr.mxu0 %v438_v3  ;;  %v619_v40 = vshrl.u32 %v193_v39, 7  ;;  %v454_v58 = vunpack.c.h.bf16 %v458_v57  ;;  %v453_v59 = vunpack.c.l.bf16 %v458_v57  ;;  %v450_v61 = vunpack.c.h.bf16 %v457_v60 }
  0x2b   :  { %476 = vmatpush3.msra.mxu0 %v438_v3  ;;  %482 = vmatprep.subr.mxu1 %v446_v8  ;;  %v449_v62 = vunpack.c.l.bf16 %v457_v60 }
  0x2c   :  { %477 = vmatprep.subr.mxu0 %v437_v2  ;;  %483 = vmatpush3.msra.mxu1 %v446_v8  ;;  %v195_v44 = vsub.s32 0, %v619_v40  ;;  %v201_v48 = vsub.s32 1, %v619_v40 }
  0x2d   :  { %478 = vmatpush3.msra.mxu0 %v437_v2  ;;  %484 = vmatprep.subr.mxu1 %v445_v7 }
  0x2e   :  { %480 = vmatmul.mubr.msk.f32.vlgmr.msra.gmra.mxu0 %vm76_vm0, %v75_v4  ;;  %485 = vmatpush3.msra.mxu1 %v445_v7 }
  0x2f   :  { %486 = vmatprep.subr.mxu1 %v442_v9  ;;  %493 = vmatprep.subr.mxu0 %v454_v58 }
  0x30   :  { %487 = vmatpush3.msra.mxu1 %v442_v9  ;;  %494 = vmatpush3.msra.mxu0 %v454_v58 }
  0x31   :  { %488 = vmatprep.subr.mxu1 %v441_v10  ;;  %495 = vmatprep.subr.mxu0 %v453_v59 }
  0x32   :  { %489 = vmatpush3.msra.mxu1 %v441_v10  ;;  %496 = vmatpush3.msra.mxu0 %v453_v59 }
  0x33   :  { %497 = vmatprep.subr.mxu0 %v450_v61 }
  0x34   :  { %498 = vmatpush3.msra.mxu0 %v450_v61 }
  0x35   :  { %499 = vmatprep.subr.mxu0 %v449_v62 }
  0x36   :  { %500 = vmatpush3.msra.mxu0 %v449_v62 }
  0xee   :  { %v481_v11 = vpop.f32.mrf.mxu0 }
  0xef   :  { %v171_v12 = vmul.f32 %v481_v11, %v481_v11  ;;  %v160_v14 = vsel %vm158_vm1, %v481_v11, 0.0 }
  0xf0   :  { %v149_v13 = vpop.f32.mrf.mxu0 }
  0xf1   :  { %v159_v15 = vsel %vm158_vm1, %v149_v13, 0.0  ;;  %v170_v16 = vmul.f32 %v149_v13, %v149_v13  ;;  %v173_v18 = vsel %vm158_vm1, %v171_v12, 0.0 }
  0xf2   :  { %v161_v17 = vadd.f32 %v160_v14, %v159_v15 }
  0xf3   :  { %v172_v19 = vsel %vm158_vm1, %v170_v16, 0.0 }
  0xf4   :  { %v162_v20 = vrot.slane %v161_v17, 4  ;;  %v174_v21 = vadd.f32 %v173_v18, %v172_v19 }
  0xf6   :  { %v163_v22 = vadd.f32 %v162_v20, %v161_v17  ;;  %v175_v23 = vrot.slane %v174_v21, 4 }
  0xf8   :  { %v164_v24 = vrot.slane %v163_v22, 2  ;;  %v176_v25 = vadd.f32 %v175_v23, %v174_v21 }
  0xfa   :  { %v165_v26 = vadd.f32 %v164_v24, %v163_v22  ;;  %v177_v27 = vrot.slane %v176_v25, 2 }
  0xfc   :  { %v166_v28 = vrot.slane %v165_v26, 1  ;;  %v178_v29 = vadd.f32 %v177_v27, %v176_v25 }
  0xfe   :  { %v167_v30 = vadd.f32 %v166_v28, %v165_v26  ;;  %v179_v31 = vrot.slane %v178_v29, 1 }
 0x100   :  { %v169_v32 = vmul.f32 0.0625, %v167_v30  ;;  %v180_v33 = vadd.f32 %v179_v31, %v178_v29  ;;  %v323_v29 = vsub.s32 2, %v619_v40 }
 0x102   :  { %v181_v34 = vmul.f32 0.0625, %v180_v33  ;;  %v182_v35 = vmul.f32 %v169_v32, %v169_v32  ;;  %v329_v33 = vsub.s32 3, %v619_v40 }
 0x104   :  { %v183_v36 = vsub.f32 %v181_v34, %v182_v35 }
 0x106   :  { %v184_v37 = vmax.f32 %v183_v36, 0.0 }
 0x108   :  { %v185_v38 = vadd.f32 1e-05, %v184_v37 }
 0x10a   :  { %511 = vrsqrt.f32 %v185_v38 }
 0x117   :  { %v512_v42 = vpop.eup %511 }
 0x118   :  { %v187_v43 = vmul.f32 %v512_v42, %v621_v41 }
 0x11a   :  { %v188_v45 = vmul.f32 %v187_v43, %v169_v32  ;;  %v196_v46 = vrot.slane %v187_v43, %v195_v44  ;;  %v337_v44 = vsub.s32 4, %v619_v40 }
 0x11c   :  { %v190_v47 = vrot.slane %v188_v45, 7  ;;  %v197_v50 = vmul.f32 %v196_v46, %v149_v13  ;;  %v198_v51 = vmul.f32 %v481_v11, %v196_v46  ;;  %v338_v45 = vrot.slane %v621_v41, %v337_v44 }
 0x11e   :  { %v192_v49 = vsub.f32 %v621_v41, %v190_v47 }
 0x120   :  { %v202_v52 = vrot.slane %v192_v49, %v201_v48 }
 0x122   :  { %v203_v53 = vadd.f32 %v202_v52, %v197_v50  ;;  %v204_v54 = vadd.f32 %v202_v52, %v198_v51 }
 0x124   :  { %v205_v55 = vmax.f32 %v203_v53, 0.0  ;;  %v206_v56 = vmax.f32 %v204_v54, 0.0 }
 0x126   :  { %490 = vmatprep.mubr.msk.f32.mxu1 %vm158_vm1, %v205_v55 }
 0x127   :  { %491 = vmatmul.mubr.msk.f32.vlgmr.msra.gmra.mxu1 %vm158_vm1, %v206_v56 }
 0x1e7   :  { %v492_v63 = vpop.f32.mrf.mxu1 }
 0x1e8   :  { %v299_v0 = vmul.f32 %v492_v63, %v492_v63  ;;  %v289_v2 = vsel %vm158_vm1, %v492_v63, 0.0 }
 0x1e9   :  { %v279_v1 = vpop.f32.mrf.mxu1 }
 0x1ea   :  { %v288_v3 = vsel %vm158_vm1, %v279_v1, 0.0  ;;  %v298_v4 = vmul.f32 %v279_v1, %v279_v1  ;;  %v301_v6 = vsel %vm158_vm1, %v299_v0, 0.0 }
 0x1eb   :  { %v290_v5 = vadd.f32 %v289_v2, %v288_v3 }
 0x1ec   :  { %v300_v7 = vsel %vm158_vm1, %v298_v4, 0.0 }
 0x1ed   :  { %v291_v8 = vrot.slane %v290_v5, 4  ;;  %v302_v9 = vadd.f32 %v301_v6, %v300_v7 }
 0x1ef   :  { %v292_v10 = vadd.f32 %v291_v8, %v290_v5  ;;  %v303_v11 = vrot.slane %v302_v9, 4 }
 0x1f1   :  { %v293_v12 = vrot.slane %v292_v10, 2  ;;  %v304_v13 = vadd.f32 %v303_v11, %v302_v9 }
 0x1f3   :  { %v294_v14 = vadd.f32 %v293_v12, %v292_v10  ;;  %v305_v15 = vrot.slane %v304_v13, 2 }
 0x1f5   :  { %v295_v16 = vrot.slane %v294_v14, 1  ;;  %v306_v17 = vadd.f32 %v305_v15, %v304_v13 }
 0x1f7   :  { %v296_v18 = vadd.f32 %v295_v16, %v294_v14  ;;  %v307_v19 = vrot.slane %v306_v17, 1 }
 0x1f9   :  { %v297_v20 = vmul.f32 0.0625, %v296_v18  ;;  %v308_v21 = vadd.f32 %v307_v19, %v306_v17 }
 0x1fb   :  { %v309_v22 = vmul.f32 0.0625, %v308_v21  ;;  %v310_v23 = vmul.f32 %v297_v20, %v297_v20 }
 0x1fd   :  { %v311_v24 = vsub.f32 %v309_v22, %v310_v23 }
 0x1ff   :  { %v312_v25 = vmax.f32 %v311_v24, 0.0 }
 0x201   :  { %v313_v26 = vadd.f32 1e-05, %v312_v25 }
 0x203   :  { %513 = vrsqrt.f32 %v313_v26 }
 0x210   :  { %v514_v27 = vpop.eup %513 }
 0x211   :  { %v315_v28 = vmul.f32 %v514_v27, %v621_v41 }
 0x213   :  { %v316_v30 = vmul.f32 %v315_v28, %v297_v20  ;;  %v324_v32 = vrot.slane %v315_v28, %v323_v29 }
 0x215   :  { %v318_v31 = vrot.slane %v316_v30, 7  ;;  %v325_v35 = vmul.f32 %v324_v32, %v279_v1  ;;  %v326_v36 = vmul.f32 %v492_v63, %v324_v32 }
 0x217   :  { %v320_v34 = vsub.f32 %v621_v41, %v318_v31 }
 0x219   :  { %v330_v37 = vrot.slane %v320_v34, %v329_v33 }
 0x21b   :  { %v331_v38 = vadd.f32 %v330_v37, %v325_v35  ;;  %v332_v39 = vadd.f32 %v330_v37, %v326_v36 }
 0x21d   :  { %v333_v42 = vmax.f32 %v331_v38, 0.0  ;;  %v334_v43 = vmax.f32 %v332_v39, 0.0 }
 0x21f   :  { %501 = vmatprep.mubr.msk.f32.mxu0 %vm158_vm1, %v333_v42 }
 0x220   :  { %502 = vmatmul.mubr.msk.f32.vlgmr.msra.gmra.mxu0 %vm158_vm1, %v334_v43 }
 0x2e0   :  { %v503_v46 = vpop.f32.mrf.mxu0 }
 0x2e1   :  { %v417_v47 = vadd.f32 %v503_v46, %v338_v45 }
 0x2e2   :  { %v411_v48 = vpop.f32.mrf.mxu0 }
 0x2e3   :  { %422 = vst.msk [vmem:[%s650_s3 + $0x8] sm:$0xff] %vm420_vm2, %v417_v47  ;;  %v412_v49 = vadd.f32 %v411_v48, %v338_v45 }
 0x2e5   :  { %421 = vst.msk [vmem:[%s650_s3] sm:$0xff] %vm420_vm2, %v412_v49 }
 0x2e6   :  { %427 = vsyncpa [#allocation3], 1 }
 0x2e7   :  { %428 = vsyncpa [#allocation5], 1 }

</bundles_post_ra>
